<compile_context>
chip_gen: v6e
topology: v6e:2x2x1
jax: 0.10.0
libtpu: 0.0.40
codegen_flags: <defaults>
</compile_context>

<pallas_src>
import jax
import jax.numpy as jnp
from jax.experimental import pallas as pl
from jax.experimental.pallas import tpu as pltpu


# --------------------------------------------------------------------------
# Kernel
# --------------------------------------------------------------------------
def patch_attention_kernel(
    cg_ref,       # (bt, C+G)        concat(clinical, gene) inputs
    wxf_ref,      # (bt*P, W)        WSI patches, flattened over (batch, patch)
    w_base_ref,   # (C+G, H)         fused fc_c/fc_g + fcs-layer-1 (cg block)
    b_base_ref,   # (1, H)
    ww_ref,       # (W, W4p)         fc_w weight, transposed + lane-padded
    bw_ref,       # (1, W4p)
    w1w_ref,      # (W4p, H)         fcs layer 1, WSI block, transposed
    w2_ref,       # (1, H)           fcs layer 2 weight (row vector)
    b2_ref,       # (1, 1)           fcs layer 2 bias (SMEM scalar)
    out_ref,      # (bt, W4p)
):
    f32 = jnp.float32
    bt = cg_ref.shape[0]
    P = wxf_ref.shape[0] // bt

    cg = cg_ref[...]                                                   # (bt, C+G)
    wxf = wxf_ref[...]                                                 # (bt*P, W)

    # Patch-invariant path: one matmul replaces fc_c, fc_g and the cg block
    # of the fcs first layer (weights fused on the host).
    base = jnp.dot(cg, w_base_ref[...],
                   preferred_element_type=f32) + b_base_ref[...]       # (bt, H)

    # fc_w projection, flattened over (batch, patch) -> one big MXU matmul.
    wxp = jnp.dot(wxf, ww_ref[...],
                  preferred_element_type=f32) + bw_ref[...]            # (bt*P, W4p)

    # fcs first layer, WSI block (flat), then broadcast-add base + ReLU.
    hw = jnp.dot(wxp.astype(w1w_ref.dtype), w1w_ref[...],
                 preferred_element_type=f32)                           # (bt*P, H)
    h = jnp.maximum(base[:, None, :] + hw.reshape(bt, P, -1), 0.0)     # (bt, P, H)

    # fcs second layer (out_features == 1): VPU multiply + lane reduction.
    scores = jnp.sum(h * w2_ref[...][None, :, :], axis=-1) + b2_ref[0, 0]   # (bt, P)

    # Softmax over the patch axis (dim=1 in the PyTorch module), f32 math.
    m = jnp.max(scores, axis=1, keepdims=True)
    e = jnp.exp(scores - m)
    attn = e * pl.reciprocal(jnp.sum(e, axis=1, keepdims=True), approx=False)  # (bt, P)

    # Attention-weighted pooling over patches as a contraction.
    wxp3 = wxp.reshape(bt, P, -1)                                      # (bt, P, W4p)
    ctx = jnp.einsum('bqp,bpv->bqv', attn[:, None, :], wxp3,
                     preferred_element_type=f32)                       # (bt, 1, W4p)
    out_ref[...] = ctx.reshape(bt, -1).astype(out_ref.dtype)


# --------------------------------------------------------------------------
# Host-side parameter packing (transpose / fuse / lane-pad once, off the hot path)
# --------------------------------------------------------------------------
def pack_params(p, clinical_dim, gene_dim, wsi_dim, hidden_dim,
                compute_dtype=jnp.float32):
    """Fuse + transpose + lane-pad the PyTorch-convention params.

    `compute_dtype=jnp.bfloat16` casts the matmul operands (recommended on
    v6e / v5e for MXU throughput; accumulation stays f32 in-kernel).  The
    demo below keeps f32 to preserve the 1e-5 reference tolerance.
    """
    C, G, H = clinical_dim, gene_dim, hidden_dim
    W4 = wsi_dim // 4
    W4p = ((W4 + 127) // 128) * 128          # lane-dense (multiple of 128)

    # (in, out) layouts.
    wc_t = p['wc'].T                         # (C, C)
    wg_t = p['wg'].T                         # (G, G)
    ww_t = p['ww'].T                         # (W, W4)
    w1c_t = p['w1c'].T                       # (C, H)
    w1g_t = p['w1g'].T                       # (G, H)
    w1w_t = p['w1w'].T                       # (W4, H)

    # base = (cat(cx,gx) @ blockdiag(wc_t, wg_t) + cat(bc,bg)) @ [w1c_t; w1g_t] + b1
    #      =  cat(cx,gx) @ w_base + b_base            (exact algebraic fusion)
    w_cg = jnp.zeros((C + G, C + G), jnp.float32)
    w_cg = w_cg.at[:C, :C].set(wc_t).at[C:, C:].set(wg_t)
    w1cg_t = jnp.concatenate([w1c_t, w1g_t], axis=0)          # (C+G, H)
    b_cg = jnp.concatenate([p['bc'], p['bg']], axis=1)        # (1, C+G)
    w_base = w_cg @ w1cg_t                                    # (C+G, H)
    b_base = b_cg @ w1cg_t + p['b1']                          # (1, H)

    # Lane-pad the fc_w output dim (padded columns are exactly zero).
    ww_t_p = jnp.zeros((wsi_dim, W4p), jnp.float32).at[:, :W4].set(ww_t)
    bw_p = jnp.zeros((1, W4p), jnp.float32).at[:, :W4].set(p['bw'])
    w1w_t_p = jnp.zeros((W4p, H), jnp.float32).at[:W4, :].set(w1w_t)

    return {
        'w_base': w_base.astype(compute_dtype),
        'b_base': b_base,                       # f32, added post-accumulation
        'ww_t': ww_t_p.astype(compute_dtype),
        'bw_p': bw_p,                           # f32
        'w1w_t': w1w_t_p.astype(compute_dtype),
        'w2': p['w2'],                          # (1, H) f32, used on VPU
        'b2': p['b2'],                          # (1, 1) f32, SMEM scalar
        'w4': W4,
        'w4p': W4p,
        'compute_dtype': compute_dtype,
    }


# --------------------------------------------------------------------------
# Wrapper
# --------------------------------------------------------------------------
def patch_attention_net(cx, gx, wx, packed, *, b_tile=None):
    B, P, W = wx.shape
    CG = packed['w_base'].shape[0]
    H = packed['w_base'].shape[1]
    W4, W4p = packed['w4'], packed['w4p']
    cdt = packed['compute_dtype']

    # Batch tile: multiple of 8 sublanes when possible (else whole batch).
    if b_tile is None:
        b_tile = 8 if (B >= 8 and B % 8 == 0) else B
    assert B % b_tile == 0
    grid = (B // b_tile,)

    # Host-side layout plumbing: fuse clinical+gene, flatten (B, P) -> B*P.
    cg = jnp.concatenate([cx, gx], axis=1).astype(cdt)        # (B, C+G)
    wxf = wx.reshape(B * P, W).astype(cdt)                    # (B*P, W)

    out = pl.pallas_call(
        patch_attention_kernel,
        out_shape=jax.ShapeDtypeStruct((B, W4p), jnp.float32),
        grid=grid,
        in_specs=[
            pl.BlockSpec((b_tile, CG), lambda i: (i, 0)),          # cg
            pl.BlockSpec((b_tile * P, W), lambda i: (i, 0)),       # wxf
            pl.BlockSpec((CG, H), lambda i: (0, 0)),               # w_base
            pl.BlockSpec((1, H), lambda i: (0, 0)),                # b_base
            pl.BlockSpec((W, W4p), lambda i: (0, 0)),              # ww_t
            pl.BlockSpec((1, W4p), lambda i: (0, 0)),              # bw
            pl.BlockSpec((W4p, H), lambda i: (0, 0)),              # w1w_t
            pl.BlockSpec((1, H), lambda i: (0, 0)),                # w2
            pl.BlockSpec(memory_space=pltpu.MemorySpace.SMEM),     # b2 scalar
        ],
        out_specs=pl.BlockSpec((b_tile, W4p), lambda i: (i, 0)),
        compiler_params=pltpu.CompilerParams(
            dimension_semantics=("parallel",)),
    )(cg, wxf, packed['w_base'], packed['b_base'], packed['ww_t'],
      packed['bw_p'], packed['w1w_t'], packed['w2'], packed['b2'])

    return out[:, :W4]


# --------------------------------------------------------------------------
# Synthetic params (PyTorch nn.Linear convention) + pure-JAX reference
# --------------------------------------------------------------------------
def init_params(key, clinical_dim, gene_dim, wsi_dim, hidden_dim):
    W4 = wsi_dim // 4
    in_dim = clinical_dim + gene_dim + W4
    ks = jax.random.split(key, 10)
    s = 0.05
    w1 = jax.random.normal(ks[6], (hidden_dim, in_dim), jnp.float32) * s
    return {
        'wc': jax.random.normal(ks[0], (clinical_dim, clinical_dim), jnp.float32) * s,
        'bc': jax.random.normal(ks[1], (1, clinical_dim), jnp.float32) * s,
        'wg': jax.random.normal(ks[2], (gene_dim, gene_dim), jnp.float32) * s,
        'bg': jax.random.normal(ks[3], (1, gene_dim), jnp.float32) * s,
        'ww': jax.random.normal(ks[4], (W4, wsi_dim), jnp.float32) * s,
        'bw': jax.random.normal(ks[5], (1, W4), jnp.float32) * s,
        'w1c': w1[:, :clinical_dim],
        'w1g': w1[:, clinical_dim:clinical_dim + gene_dim],
        'w1w': w1[:, clinical_dim + gene_dim:],
        'b1': jax.random.normal(ks[7], (1, hidden_dim), jnp.float32) * s,
        'w2': jax.random.normal(ks[8], (1, hidden_dim), jnp.float32) * s,
        'b2': jax.random.normal(ks[9], (1, 1), jnp.float32) * s,
    }


def reference(cx, gx, wx, p):
    """Pure-JAX mirror of the PyTorch forward (per-patch loop)."""
    cxp = cx @ p['wc'].T + p['bc']
    gxp = gx @ p['wg'].T + p['bg']
    wxp = jnp.einsum('bpw,vw->bpv', wx, p['ww']) + p['bw'][None]
    P = wx.shape[1]
    w1 = jnp.concatenate([p['w1c'], p['w1g'], p['w1w']], axis=1)
    scores = []
    for i in range(P):
        cat = jnp.concatenate([cxp, gxp, wxp[:, i, :]], axis=1)
        h = jnp.maximum(cat @ w1.T + p['b1'], 0.0)
        scores.append(h @ p['w2'].T + p['b2'])
    s = jnp.stack(scores, axis=1)                 # (B, P, 1)
    attn = jax.nn.softmax(s, axis=1)
    return jnp.sum(attn * wxp, axis=1)


# --------------------------------------------------------------------------
# Demo / self-check
# --------------------------------------------------------------------------
if __name__ == "__main__":
    B, clinical_dim, gene_dim, patch_num, wsi_dim, hidden_dim = 16, 8, 16, 8, 32, 32

    key = jax.random.PRNGKey(0)
    kc, kg, kw, kp = jax.random.split(key, 4)
    cx = jax.random.normal(kc, (B, clinical_dim), jnp.float32)
    gx = jax.random.normal(kg, (B, gene_dim), jnp.float32)
    wx = jax.random.normal(kw, (B, patch_num, wsi_dim), jnp.float32)

    params = init_params(kp, clinical_dim, gene_dim, wsi_dim, hidden_dim)
    packed = pack_params(params, clinical_dim, gene_dim, wsi_dim, hidden_dim,
                         compute_dtype=jnp.float32)

    out = patch_attention_net(cx, gx, wx, packed)
    out = jax.block_until_ready(out)

    ref = reference(cx, gx, wx, params)
    assert out.shape == (B, wsi_dim // 4), out.shape
    err = float(jnp.max(jnp.abs(out - ref)))
    assert jnp.allclose(out, ref, atol=1e-5, rtol=1e-5), err

    print("KERNEL_OK")
</pallas_src>

<mosaic_0001>
module attributes {stable_mosaic.version = 11 : i64} {
  func.func @patch_attention_kernel(%arg0: i32, %arg1: memref<8x24xf32, #tpu.memory_space<vmem>>, %arg2: memref<64x32xf32, #tpu.memory_space<vmem>>, %arg3: memref<24x32xf32, #tpu.memory_space<vmem>>, %arg4: memref<1x32xf32, #tpu.memory_space<vmem>>, %arg5: memref<32x128xf32, #tpu.memory_space<vmem>>, %arg6: memref<1x128xf32, #tpu.memory_space<vmem>>, %arg7: memref<128x32xf32, #tpu.memory_space<vmem>>, %arg8: memref<1x32xf32, #tpu.memory_space<vmem>>, %arg9: memref<1x1xf32, #tpu.memory_space<smem>>, %arg10: memref<8x128xf32, #tpu.memory_space<vmem>>) attributes {dimension_semantics = [#tpu.dimension_semantics<parallel>], iteration_bounds = array<i64: 2>, scalar_prefetch = 0 : i64, scratch_operands = 0 : i64, tpu.core_type = #tpu.core_type<tc>, window_params = [{transform_indices = @transform_0, window_bounds = array<i64: 8, 24>}, {transform_indices = @transform_1, window_bounds = array<i64: 64, 32>}, {pipeline_mode = #tpu.pipeline_mode<synchronous>, transform_indices = @transform_2, window_bounds = array<i64: 24, 32>}, {pipeline_mode = #tpu.pipeline_mode<synchronous>, transform_indices = @transform_3, window_bounds = array<i64: 1, 32>}, {pipeline_mode = #tpu.pipeline_mode<synchronous>, transform_indices = @transform_4, window_bounds = array<i64: 32, 128>}, {pipeline_mode = #tpu.pipeline_mode<synchronous>, transform_indices = @transform_5, window_bounds = array<i64: 1, 128>}, {pipeline_mode = #tpu.pipeline_mode<synchronous>, transform_indices = @transform_6, window_bounds = array<i64: 128, 32>}, {pipeline_mode = #tpu.pipeline_mode<synchronous>, transform_indices = @transform_7, window_bounds = array<i64: 1, 32>}, {transform_indices = @transform_8, window_bounds = array<i64: 1, 1>}, {transform_indices = @transform_9, window_bounds = array<i64: 8, 128>}]} {
    %c0 = arith.constant 0 : index
    %c0_0 = arith.constant 0 : index
    %0 = vector.load %arg1[%c0, %c0_0] : memref<8x24xf32, #tpu.memory_space<vmem>>, vector<8x24xf32>
    %c0_1 = arith.constant 0 : index
    %c0_2 = arith.constant 0 : index
    %1 = vector.load %arg2[%c0_1, %c0_2] : memref<64x32xf32, #tpu.memory_space<vmem>>, vector<64x32xf32>
    %c0_3 = arith.constant 0 : index
    %c0_4 = arith.constant 0 : index
    %2 = vector.load %arg3[%c0_3, %c0_4] : memref<24x32xf32, #tpu.memory_space<vmem>>, vector<24x32xf32>
    %cst = arith.constant dense<0.000000e+00> : vector<8x32xf32>
    %3 = tpu.matmul %0, %2, %cst {dimension_numbers = #tpu.dot_dimension_numbers<[1], [0], [0], [1], [0, 0, 1, 1], [], []>} : vector<8x24xf32>, vector<24x32xf32>, vector<8x32xf32> -> vector<8x32xf32>
    %c0_5 = arith.constant 0 : index
    %c0_6 = arith.constant 0 : index
    %4 = vector.load %arg4[%c0_5, %c0_6] : memref<1x32xf32, #tpu.memory_space<vmem>>, vector<1x32xf32>
    %5 = vector.broadcast %4 : vector<1x32xf32> to vector<8x32xf32>
    %6 = arith.addf %3, %5 : vector<8x32xf32>
    %c0_7 = arith.constant 0 : index
    %c0_8 = arith.constant 0 : index
    %7 = vector.load %arg5[%c0_7, %c0_8] : memref<32x128xf32, #tpu.memory_space<vmem>>, vector<32x128xf32>
    %cst_9 = arith.constant dense<0.000000e+00> : vector<64x128xf32>
    %8 = tpu.matmul %1, %7, %cst_9 {dimension_numbers = #tpu.dot_dimension_numbers<[1], [0], [0], [1], [0, 0, 1, 1], [], []>} : vector<64x32xf32>, vector<32x128xf32>, vector<64x128xf32> -> vector<64x128xf32>
    %c0_10 = arith.constant 0 : index
    %c0_11 = arith.constant 0 : index
    %9 = vector.load %arg6[%c0_10, %c0_11] : memref<1x128xf32, #tpu.memory_space<vmem>>, vector<1x128xf32>
    %10 = vector.broadcast %9 : vector<1x128xf32> to vector<64x128xf32>
    %11 = arith.addf %8, %10 : vector<64x128xf32>
    %c0_12 = arith.constant 0 : index
    %c0_13 = arith.constant 0 : index
    %12 = vector.load %arg7[%c0_12, %c0_13] : memref<128x32xf32, #tpu.memory_space<vmem>>, vector<128x32xf32>
    %cst_14 = arith.constant dense<0.000000e+00> : vector<64x32xf32>
    %13 = tpu.matmul %11, %12, %cst_14 {dimension_numbers = #tpu.dot_dimension_numbers<[1], [0], [0], [1], [0, 0, 1, 1], [], []>} : vector<64x128xf32>, vector<128x32xf32>, vector<64x32xf32> -> vector<64x32xf32>
    %14 = vector.shape_cast %6 : vector<8x32xf32> to vector<8x1x32xf32>
    %15 = vector.shape_cast %13 : vector<64x32xf32> to vector<8x8x32xf32>
    %16 = vector.broadcast %14 : vector<8x1x32xf32> to vector<8x8x32xf32>
    %17 = arith.addf %16, %15 : vector<8x8x32xf32>
    %cst_15 = arith.constant 0.000000e+00 : f32
    %18 = vector.broadcast %cst_15 : f32 to vector<8x8x32xf32>
    %19 = arith.maximumf %17, %18 : vector<8x8x32xf32>
    %c0_16 = arith.constant 0 : index
    %c0_17 = arith.constant 0 : index
    %20 = vector.load %arg8[%c0_16, %c0_17] : memref<1x32xf32, #tpu.memory_space<vmem>>, vector<1x32xf32>
    %21 = vector.shape_cast %20 : vector<1x32xf32> to vector<1x1x32xf32>
    %22 = vector.broadcast %21 : vector<1x1x32xf32> to vector<8x8x32xf32>
    %23 = arith.mulf %19, %22 : vector<8x8x32xf32>
    %cst_18 = arith.constant dense<0.000000e+00> : vector<8x8xf32>
    %24 = vector.multi_reduction <add>, %23, %cst_18 [2] : vector<8x8x32xf32> to vector<8x8xf32>
    %c0_19 = arith.constant 0 : index
    %c0_20 = arith.constant 0 : index
    %25 = memref.load %arg9[%c0_19, %c0_20] : memref<1x1xf32, #tpu.memory_space<smem>>
    %26 = vector.broadcast %25 : f32 to vector<8x8xf32>
    %27 = arith.addf %24, %26 : vector<8x8xf32>
    %cst_21 = arith.constant dense<0xFF800000> : vector<8xf32>
    %28 = vector.multi_reduction <maximumf>, %27, %cst_21 [1] : vector<8x8xf32> to vector<8xf32>
    %29 = vector.shape_cast %28 : vector<8xf32> to vector<8x1xf32>
    %30 = vector.broadcast %29 : vector<8x1xf32> to vector<8x8xf32>
    %31 = arith.subf %27, %30 : vector<8x8xf32>
    %32 = math.exp %31 : vector<8x8xf32>
    %cst_22 = arith.constant dense<0.000000e+00> : vector<8xf32>
    %33 = vector.multi_reduction <add>, %32, %cst_22 [1] : vector<8x8xf32> to vector<8xf32>
    %34 = vector.shape_cast %33 : vector<8xf32> to vector<8x1xf32>
    %35 = tpu.reciprocal %34 : vector<8x1xf32> -> vector<8x1xf32>
    %36 = vector.broadcast %35 : vector<8x1xf32> to vector<8x8xf32>
    %37 = arith.mulf %32, %36 : vector<8x8xf32>
    %38 = vector.shape_cast %11 : vector<64x128xf32> to vector<8x8x128xf32>
    %39 = vector.shape_cast %37 : vector<8x8xf32> to vector<8x1x8xf32>
    "tpu.trace_start"() <{level = 10 : i32, message = "bqp,bpv->bqv"}> : () -> ()
    %cst_23 = arith.constant dense<0.000000e+00> : vector<8x1x128xf32>
    %40 = tpu.matmul %39, %38, %cst_23 {dimension_numbers = #tpu.dot_dimension_numbers<[2], [1], [1], [2], [0, 0, 0, 1, 1, 2], [0], [0]>} : vector<8x1x8xf32>, vector<8x8x128xf32>, vector<8x1x128xf32> -> vector<8x1x128xf32>
    "tpu.trace_stop"() : () -> ()
    %41 = vector.shape_cast %40 : vector<8x1x128xf32> to vector<8x128xf32>
    %c0_24 = arith.constant 0 : index
    %c0_25 = arith.constant 0 : index
    %42 = vector.load %arg10[%c0_24, %c0_25] : memref<8x128xf32, #tpu.memory_space<vmem>>, vector<8x128xf32>
    tpu.vector_store %arg10[%c0_24, %c0_25], %41 {strides = array<i32>} : memref<8x128xf32, #tpu.memory_space<vmem>>, vector<8x128xf32>,
    return
  }
  func.func @transform_0(%arg0: i32) -> (i32, i32) {
    %c0_i32 = arith.constant 0 : i32
    %c0_i32_0 = arith.constant 0 : i32
    return %arg0, %c0_i32 : i32, i32
  }
  func.func @transform_1(%arg0: i32) -> (i32, i32) {
    %c0_i32 = arith.constant 0 : i32
    %c0_i32_0 = arith.constant 0 : i32
    return %arg0, %c0_i32 : i32, i32
  }
  func.func @transform_2(%arg0: i32) -> (i32, i32) {
    %c0_i32 = arith.constant 0 : i32
    %c0_i32_0 = arith.constant 0 : i32
    %c0_i32_1 = arith.constant 0 : i32
    return %c0_i32, %c0_i32_0 : i32, i32
  }
  func.func @transform_3(%arg0: i32) -> (i32, i32) {
    %c0_i32 = arith.constant 0 : i32
    %c0_i32_0 = arith.constant 0 : i32
    %c0_i32_1 = arith.constant 0 : i32
    return %c0_i32, %c0_i32_0 : i32, i32
  }
  func.func @transform_4(%arg0: i32) -> (i32, i32) {
    %c0_i32 = arith.constant 0 : i32
    %c0_i32_0 = arith.constant 0 : i32
    %c0_i32_1 = arith.constant 0 : i32
    return %c0_i32, %c0_i32_0 : i32, i32
  }
  func.func @transform_5(%arg0: i32) -> (i32, i32) {
    %c0_i32 = arith.constant 0 : i32
    %c0_i32_0 = arith.constant 0 : i32
    %c0_i32_1 = arith.constant 0 : i32
    return %c0_i32, %c0_i32_0 : i32, i32
  }
  func.func @transform_6(%arg0: i32) -> (i32, i32) {
    %c0_i32 = arith.constant 0 : i32
    %c0_i32_0 = arith.constant 0 : i32
    %c0_i32_1 = arith.constant 0 : i32
    return %c0_i32, %c0_i32_0 : i32, i32
  }
  func.func @transform_7(%arg0: i32) -> (i32, i32) {
    %c0_i32 = arith.constant 0 : i32
    %c0_i32_0 = arith.constant 0 : i32
    %c0_i32_1 = arith.constant 0 : i32
    return %c0_i32, %c0_i32_0 : i32, i32
  }
  func.func @transform_8(%arg0: i32) -> (i32, i32) {
    %c0_i32 = arith.constant 0 : i32
    %c0_i32_0 = arith.constant 0 : i32
    %c0_i32_1 = arith.constant 0 : i32
    return %c0_i32, %c0_i32_0 : i32, i32
  }
  func.func @transform_9(%arg0: i32) -> (i32, i32) {
    %c0_i32 = arith.constant 0 : i32
    %c0_i32_0 = arith.constant 0 : i32
    return %arg0, %c0_i32 : i32, i32
  }
}

</mosaic_0001>

<bundles_post_ra>
// kernel: tpu_custom_call.1
= control target key start
LH: loop header
LB: loop body
LE: loop exit
PB: predicated region body
PF: predicated region fallthrough
CT: control target
= control target key end

     0   :  { %s2614_s0 = inlined_call_operand.vmem [shape: f32[16,24], index: 0, kind: input, shape index: {}]   ;;  %s2615_s1 = inlined_call_operand.vmem [shape: f32[128,32], index: 1, kind: input, shape index: {}]   ;;  %s2616_s2 = inlined_call_operand.vmem [shape: f32[24,32], index: 2, kind: input, shape index: {}]   ;;  %s2617_s3 = inlined_call_operand.vmem [shape: f32[1,32], index: 3, kind: input, shape index: {}]   ;;  %s2618_s4 = inlined_call_operand.vmem [shape: f32[32,128], index: 4, kind: input, shape index: {}]   ;;  %s2619_s5 = inlined_call_operand.vmem [shape: f32[1,128], index: 5, kind: input, shape index: {}]   ;;  %s2620_s6 = inlined_call_operand.vmem [shape: f32[128,32], index: 6, kind: input, shape index: {}]   ;;  %s2621_s7 = inlined_call_operand.vmem [shape: f32[1,32], index: 7, kind: input, shape index: {}]   ;;  %s2622_s8 = inlined_call_operand.<no memory space> [shape: f32[1,1], index: 8, kind: input, shape index: {}]   ;;  %s2623_s9 = inlined_call_operand.hbm [shape: f32[16,128], index: 9, kind: output, shape index: {}]  }
   0x1   :  { %14 = sst [smem:[#allocation2]] %s2622_s8 }
   0x2   :  { %15 = vsyncpa [#allocation4], 0 }
   0x3   :  { %17 = vsyncpa [#allocation4 + $0x1], 0  ;;  %s2245_s11 = smov 0   ;;  %s2247_s12 = smov 0  }
   0x4   :  { %s2249_s13 = smov 0   ;;  %s2251_s14 = smov 0  }
   0x5 LB: > { %s2266_s8 = sadd.s32 4294967295, %s2185_s14   ;;  %s1861_s15 = sadd.s32 4294967294, %s2185_s14   ;;  %s2185_s14 = sphi %s2251_s14, %s2629_s14   ;;  %s2181_s13 = sphi %s2249_s13, %s2628_s13   ;;  %s2177_s12 = sphi %s2247_s12, %s2627_s12   ;;  %s2173_s11 = sphi %s2245_s11, %s2626_s11  }
   0x6   : > { %s2270_s16 = sadd.s32 1, %s2185_s14   ;;  %s229_s17 = sadd.s32 1, %s2181_s13 }
   0x7   : > { %s226_s18 = ssub.s32 %s2185_s14, %s2270_s16  ;;  %p239_p0 = scmp.ne.s32.totalorder %s2181_s13, %s2177_s12 }
   0x8   : > { %p227_p1 = scmp.eq.s32.totalorder %s226_s18, 0  ;;  %p240_p2 = scmp.eq.s32.totalorder %s2266_s8, 1 }
   0x9   : > { %p245_p3 = scmp.ne.s32.totalorder %s2177_s12, %s2173_s11  ;;  %p246_p4 = scmp.eq.s32.totalorder %s1861_s15, 1 }
   0xa   : > { %s2281_s19 = scalar_select %p227_p1, %s2181_s13, %s229_s17  }
   0xb   : > { %p2283_p5 = por %p240_p2, %p239_p0  ;;  %p2287_p6 = por %p246_p4, %p245_p3 }
   0xc   : > { %p1864_p7 = scmp.ge.s32.totalorder %s2185_s14, 1  ;;  %p301_p8 = scmp.lt.s32.totalorder %s2185_s14, 3 }
   0xe   : > { %p302_p9 = pnand %p1864_p7, %p301_p8 }
   0xf   : > { %s1867_s26 = sshll.u32 (!%p302_p9), %s2266_s8, 3  ;;  %p341_p11 = scmp.lt.s32.totalorder (!%p302_p9), %s2266_s8, 1 }
  0x10   : > { %305 = sbr.rel (%p302_p9) target bundleno = 1417 (0x589), region = 56  ;;  %p346_p10 = scmp.lt.s32.totalorder (!%p302_p9), %s1867_s26, 15 }
  0x11   : > { %s851_s17 = sld [smem:[#allocation2]] (!%p302_p9)  ;;  %s1890_s23 = sshll.u32 (!%p302_p9), %s2266_s8, 7 }
  0x12   : > { %s2578_s28 = scalar_lea.hbm (!%p302_p9), %s2623_s9, %s1890_s23  ;;  %s2191_s10 = smov (!%p302_p9), [#allocation3]  }
  0x13   : > { %s2129_s15 = sshll.u32 (!%p302_p9), %s2191_s10, 4  ;;  %s2130_s15 = int_to_ptr.vmem [resolvable:$false] %s2129_s15 }
  0x15   : > { %v447_v0 = vld [vmem:[%s2618_s4 + $0x18] sm:$0xff]  ;;  %v446_v1 = vld [vmem:[%s2618_s4 + $0x10] sm:$0xff]  ;;  %v2187_v2 = vmov 0.0   ;;  %v361_v4 = vld [vmem:[%s2616_s2 + $0x8] sm:$0xff]  ;;  %s2631_s26 = smov (!%p346_p10, %s1867_s26), 15  ;;  %vm455_vm0 = vcmask 261120   ;;  %v711_v54 = vlaneseq }
  0x16   : > { %1958 = vmatprep.subr.mxu1 %v447_v0  ;;  %1949 = vmatprep.subr.mxu0 %v2187_v2  ;;  %v362_v3 = vld [vmem:[%s2616_s2 + $0x10] sm:$0xff]  ;;  %v445_v5 = vld [vmem:[%s2618_s4 + $0x8] sm:$0xff]  ;;  %v360_v6 = vld [vmem:[%s2616_s2] sm:$0xff]  ;;  %s342_s24 = scalar_select %p341_p11, %s2266_s8, 1  ;;  %vm2188_vm1 = vmmov 0   ;;  %vm370_vm2 = vcmask 195584  }
  0x17   : > { %1959 = vmatpush3.msra.mxu1 %v447_v0  ;;  %1950 = vmatpush3.msra.mxu0 %v362_v3  ;;  %v444_v7 = vld [vmem:[%s2618_s4] sm:$0xff]  ;;  %s1868_s25 = sshll.u32 %s2631_s26, 3  ;;  %v600_v8 = vld [vmem:[%s2620_s6 + $0x78] sm:$0xff]  ;;  %v599_v13 = vld [vmem:[%s2620_s6 + $0x70] sm:$0xff]  ;;  %v2189_v52 = vmov 1966171168  }
  0x18   : > { %1960 = vmatprep.subr.mxu1 %v446_v1  ;;  %1951 = vmatprep.subr.mxu0 %v2187_v2  ;;  %s2323_s29 = scalar_lea.vmem %s2615_s1, %s1868_s25  ;;  %s1866_s30 = sshll.u32 %s342_s24, 3  ;;  %v598_v16 = vld [vmem:[%s2620_s6 + $0x68] sm:$0xff]  ;;  %v597_v17 = vld [vmem:[%s2620_s6 + $0x60] sm:$0xff]  ;;  %v596_v20 = vld [vmem:[%s2620_s6 + $0x58] sm:$0xff]  ;;  %v709_v53 = vunpack.c.l.s4 %v2189_v52  ;;  %v2423_v56 = vshrl.u32 %v711_v54, 7  ;;  %vm903_vm3 = vcmask 1041409  }
  0x19   : > { %1961 = vmatpush3.msra.mxu1 %v446_v1  ;;  %1952 = vmatpush3.msra.mxu0 %v361_v4  ;;  %v352_v9 = vld [vmem:[%s2323_s29] sm:$0xff]  ;;  %v353_v10 = vld [vmem:[%s2323_s29 + $0x8] sm:$0xff]  ;;  %v354_v11 = vld [vmem:[%s2323_s29 + $0x10] sm:$0xff]  ;;  %s344_s18 = scalar_lea.vmem %s2614_s0, %s1866_s30  ;;  %vm905_vm4 = vcmask 1042434   ;;  %vm907_vm5 = vcmask 1043459   ;;  %vm909_vm6 = vcmask 1044484  }
  0x1a   : > { %1962 = vmatprep.subr.mxu1 %v445_v5  ;;  %1953 = vmatprep.subr.mxu0 %v2187_v2  ;;  %v351_v12 = vld [vmem:[%s344_s18] sm:$0xff]  ;;  %v355_v14 = vld [vmem:[%s2323_s29 + $0x18] sm:$0xff]  ;;  %v357_v18 = vld [vmem:[%s2323_s29 + $0x28] sm:$0xff]  ;;  %v710_v55 = vunpack.c.0.s8 %v709_v53  ;;  %v2430_v1 = vsub.s32 0, %v2423_v56  ;;  %vm911_vm7 = vcmask 1045509   ;;  %vm913_vm8 = vcmask 1046534  }
  0x1b   : > { %1963 = vmatpush3.msra.mxu1 %v445_v5  ;;  %1954 = vmatpush3.msra.mxu0 %v360_v6  ;;  %v356_v15 = vld [vmem:[%s2323_s29 + $0x20] sm:$0xff]  ;;  %v358_v19 = vld [vmem:[%s2323_s29 + $0x30] sm:$0xff]  ;;  %v359_v22 = vld [vmem:[%s2323_s29 + $0x38] sm:$0xff]  ;;  %vm915_vm9 = vcmask 1047559   ;;  %vm918_vm10 = vcmask 64512   ;;  %s338_s18 = sand.u32 1, %s2177_s12  }
  0x1c   : > { %1964 = vmatprep.subr.mxu1 %v444_v7  ;;  %1955 = vmatprep.mubr.msk.f32.mxu0 %vm2188_vm1, %v2187_v2  ;;  %v595_v21 = vld [vmem:[%s2620_s6 + $0x50] sm:$0xff]  ;;  %v594_v23 = vld [vmem:[%s2620_s6 + $0x48] sm:$0xff]  ;;  %v593_v24 = vld [vmem:[%s2620_s6 + $0x40] sm:$0xff]  ;;  %v713_v59 = vsub.s32 %v710_v55, %v2423_v56  ;;  %s1865_s22 = sshll.u32 %s338_s18, 3  ;;  %s1777_s8 = scalar_lea.sflag [#allocation4], %s338_s18 }
  0x1d   : > { %1965 = vmatpush3.msra.mxu1 %v444_v7  ;;  %1966 = vmatprep.mubr.msk.f32.mxu1 %vm455_vm0, %v352_v9  ;;  %v592_v25 = vld [vmem:[%s2620_s6 + $0x38] sm:$0xff]  ;;  %v591_v26 = vld [vmem:[%s2620_s6 + $0x30] sm:$0xff]  ;;  %v590_v27 = vld [vmem:[%s2620_s6 + $0x28] sm:$0xff]  ;;  %s340_s29 = scalar_lea.vmem [#allocation3], %s1865_s22  ;;  %s2131_s26 = scalar_lea.vmem %s2130_s15, 256 }
  0x1e   : > { %1967 = vmatmul.mubr.msk.f32.vlgmr.msra.gmra.mxu1 %vm455_vm0, %v353_v10  ;;  %1978 = vmatprep.subr.mxu0 %v600_v8  ;;  %v589_v28 = vld [vmem:[%s2620_s6 + $0x20] sm:$0xff]  ;;  %v588_v29 = vld [vmem:[%s2620_s6 + $0x18] sm:$0xff]  ;;  %v587_v30 = vld [vmem:[%s2620_s6 + $0x10] sm:$0xff]  ;;  %s1790_s24 = sshll.u32 %s340_s29, 4  ;;  %s1791_s24 = int_to_ptr.vmem [resolvable:$true] %s1790_s24 }
  0x1f   : > { %1969 = vmatprep.mubr.msk.f32.mxu1 %vm455_vm0, %v354_v11  ;;  %1956 = vmatmul.mubr.msk.f32.vlgmr.msra.gmra.mxu0 %vm370_vm2, %v351_v12  ;;  %v586_v31 = vld [vmem:[%s2620_s6 + $0x8] sm:$0xff]  ;;  %v585_v32 = vld [vmem:[%s2620_s6] sm:$0xff]  ;;  %s2125_s30 = scalar_lea.vmem %s1791_s24, 128  ;;  %p2132_p1 = scmp.lt.s32.totalorder %s1791_s24, %s2130_s15 }
  0x20   : > { %1979 = vmatpush3.msra.mxu0 %v600_v8  ;;  %2022 = vmatprep.subr.mxu1 %v2187_v2  ;;  %v1871_v34 = vld [vmem:[%s2619_s5] ss:$0 sm:$0xff]  ;;  %p2126_p12 = scmp.ne.s32.totalorder %s1791_s24, %s2125_s30  ;;  %p2133_p2 = scmp.lt.s32.totalorder %s2131_s26, %s2125_s30 }
  0x21   : > { %1980 = vmatprep.subr.mxu0 %v599_v13  ;;  %v1869_v57 = vld [vmem:[%s2617_s3] ss:$0 sm:$0xff] }
  0x22   : > { %1970 = vmatmul.mubr.msk.f32.gmra.mxu1 %vm455_vm0, %v355_v14  ;;  %1981 = vmatpush3.msra.mxu0 %v599_v13  ;;  %v1880_v12 = vld [vmem:[%s2621_s7] ss:$0 sm:$0xff]  ;;  %p2127_p13 = pnand %p2126_p12, %p2283_p5  ;;  %p2134_p3 = por %p2133_p2, %p2132_p1 }
  0x23   : > { %1972 = vmatprep.mubr.msk.f32.mxu1 %vm455_vm0, %v356_v15  ;;  %1982 = vmatprep.subr.mxu0 %v598_v16 }
  0x24   : > { %1983 = vmatpush3.msra.mxu0 %v598_v16  ;;  %p2128_p0 = pneg %p2127_p13 }
  0x25   : > { %1984 = vmatprep.subr.mxu0 %v597_v17 }
  0x26   : > { %1973 = vmatmul.mubr.msk.f32.gmra.mxu1 %vm455_vm0, %v357_v18  ;;  %1985 = vmatpush3.msra.mxu0 %v597_v17  ;;  %p2135_p4 = pnand %p2134_p3, %p2128_p0 }
  0x27   : > { %1975 = vmatprep.mubr.msk.f32.mxu1 %vm455_vm0, %v358_v19  ;;  %1986 = vmatprep.subr.mxu0 %v596_v20 }
  0x28   : > { %1987 = vmatpush3.msra.mxu0 %v596_v20 }
  0x29   : > { %1988 = vmatprep.subr.mxu0 %v595_v21 }
  0x2a   : > { %1976 = vmatmul.mubr.msk.f32.gmra.mxu1 %vm455_vm0, %v359_v22  ;;  %1989 = vmatpush3.msra.mxu0 %v595_v21 }
  0x2b   : > { %1990 = vmatprep.subr.mxu0 %v594_v23  ;;  %2024 = vmatprep.mubr.msk.f32.mxu1 %vm2188_vm1, %v2187_v2 }
  0x2c   : > { %1991 = vmatpush3.msra.mxu0 %v594_v23 }
  0x2d   : > { %1992 = vmatprep.subr.mxu0 %v593_v24 }
  0x2e   : > { %1993 = vmatpush3.msra.mxu0 %v593_v24 }
  0x2f   : > { %1994 = vmatprep.subr.mxu0 %v592_v25 }
  0x30   : > { %1995 = vmatpush3.msra.mxu0 %v592_v25 }
  0x31   : > { %1996 = vmatprep.subr.mxu0 %v591_v26 }
  0x32   : > { %1997 = vmatpush3.msra.mxu0 %v591_v26 }
  0x33   : > { %1998 = vmatprep.subr.mxu0 %v590_v27 }
  0x34   : > { %1999 = vmatpush3.msra.mxu0 %v590_v27 }
  0x35   : > { %2000 = vmatprep.subr.mxu0 %v589_v28 }
  0x36   : > { %2001 = vmatpush3.msra.mxu0 %v589_v28 }
  0x37   : > { %2002 = vmatprep.subr.mxu0 %v588_v29 }
  0x38   : > { %2003 = vmatpush3.msra.mxu0 %v588_v29 }
  0x39   : > { %2004 = vmatprep.subr.mxu0 %v587_v30 }
  0x3a   : > { %2005 = vmatpush3.msra.mxu0 %v587_v30 }
  0x3b   : > { %2006 = vmatprep.subr.mxu0 %v586_v31 }
  0x3c   : > { %2007 = vmatpush3.msra.mxu0 %v586_v31 }
  0x3d   : > { %2008 = vmatprep.subr.mxu0 %v585_v32 }
  0x3e   : > { %2009 = vmatpush3.msra.mxu0 %v585_v32 }
  0xde   : > { %v1968_v33 = vpop.f32.mrf.mxu1 }
  0xdf   : > { %v440_v35 = vpop.f32.mrf.mxu0  ;;  %v2400_v39 = vadd.f32 %v1968_v33, %v1871_v34 }
  0xe0   : > { %v546_v36 = vpop.f32.mrf.mxu1  ;;  %v441_v58 = vadd.f32 %v1869_v57, %v440_v35 }
  0xe1   : > { %v547_v37 = vadd.f32 %v1871_v34, %v546_v36  ;;  %v1957_v38 = vpop.f32.mrf.mxu0 }
  0xe2   : > { %v1971_v40 = vpop.f32.mrf.mxu1  ;;  %v714_v60 = vrot.slane %v441_v58, %v713_v59  ;;  %v707_v61 = vcombine.high %v441_v58, %v441_v58 }
  0xe3   : > { %2010 = vmatprep.mubr.f32.mxu0 %v547_v37  ;;  %2023 = vmatpush3.msra.mxu1 %v547_v37  ;;  %v2406_v43 = vadd.f32 %v1971_v40, %v1871_v34 }
  0xe4   : > { %v556_v41 = vpop.f32.mrf.mxu1  ;;  %2011 = vmatmul.mubr.f32.vlgmr.msra.gmra.mxu0 %v2400_v39  ;;  %2027 = vmatprep.subr.mxu1 %v2187_v2  ;;  %v722_v62 = vcombine.high %v714_v60, %v714_v60  ;;  %v721_v63 = vrot.slane %v707_v61, %v713_v59  ;;  %v730_v3 = vrot.slane %v714_v60, %v713_v59 }
  0xe5   : > { %v2404_v42 = vadd.f32 %v1871_v34, %v556_v41 }
  0xe6   : > { %v1974_v44 = vpop.f32.mrf.mxu1  ;;  %v744_v0 = vrot.slane %v722_v62, %v713_v59  ;;  %v723_v4 = vcombine.high %v721_v63, %v721_v63  ;;  %v759_v9 = vrot.slane %v730_v3, %v2430_v1  ;;  %v752_v10 = vcombine.high %v730_v3, %v730_v3 }
  0xe7   : > { %2013 = vmatprep.mubr.f32.mxu0 %v2404_v42  ;;  %v2412_v47 = vadd.f32 %v1974_v44, %v1871_v34  ;;  %v737_v18 = vrot.slane %v721_v63, %v713_v59 }
  0xe8   : > { %v566_v45 = vpop.f32.mrf.mxu1  ;;  %2014 = vmatmul.mubr.f32.gmra.mxu0 %v2406_v43  ;;  %v763_v5 = vrot.slane %v744_v0, %v2430_v1  ;;  %v754_v6 = vcombine.high %v744_v0, %v744_v0  ;;  %v751_v13 = vrot.slane %v723_v4, %v713_v59  ;;  %v767_v21 = vrot.slane %v752_v10, %v2430_v1 }
  0xe9   : > { %v2410_v46 = vadd.f32 %v1871_v34, %v566_v45  ;;  %v775_v31 = vrot.slane %v737_v18, %v2430_v1  ;;  %v753_v35 = vcombine.high %v737_v18, %v737_v18 }
  0xea   : > { %v1977_v48 = vpop.f32.mrf.mxu1  ;;  %v771_v16 = vrot.slane %v754_v6, %v2430_v1  ;;  %v779_v24 = vrot.slane %v751_v13, %v2430_v1  ;;  %v755_v25 = vcombine.high %v751_v13, %v751_v13 }
  0xeb   : > { %2016 = vmatprep.mubr.f32.mxu0 %v2410_v46  ;;  %v2418_v51 = vadd.f32 %v1977_v48, %v1871_v34  ;;  %v783_v53 = vrot.slane %v753_v35, %v2430_v1 }
  0xec   : > { %v576_v49 = vpop.f32.mrf.mxu1  ;;  %2017 = vmatmul.mubr.f32.gmra.mxu0 %v2412_v47  ;;  %v787_v38 = vrot.slane %v755_v25, %v2430_v1 }
  0xed   : > { %v2416_v50 = vadd.f32 %v1871_v34, %v576_v49 }
  0xef   : > { %2019 = vmatprep.mubr.f32.mxu0 %v2416_v50 }
  0xf0   : > { %2020 = vmatmul.mubr.f32.gmra.mxu0 %v2418_v51 }
 0x1a4   : > { %v2012_v7 = vpop.f32.mrf.mxu0 }
 0x1a5   : > { %v797_v8 = vadd.f32 %v2012_v7, %v763_v5 }
 0x1a6   : > { %v667_v11 = vpop.f32.mrf.mxu0 }
 0x1a7   : > { %v805_v14 = vmax.f32 %v797_v8, 0.0  ;;  %v796_v15 = vadd.f32 %v759_v9, %v667_v11  ;;  %v870_v8 = vand.u32 127, %v711_v54  ;;  %v852_v9 = vstv %s851_s17 }
 0x1a8   : > { %v2015_v17 = vpop.f32.mrf.mxu0 }
 0x1a9   : > { %v804_v19 = vmax.f32 %v796_v15, 0.0  ;;  %v799_v20 = vadd.f32 %v2015_v17, %v771_v16  ;;  %v820_v22 = vmul.f32 %v1880_v12, %v805_v14  ;;  %v2453_v14 = vsub.s32 %v870_v8, %v2423_v56 }
 0x1aa   : > { %v677_v23 = vpop.f32.mrf.mxu0 }
 0x1ab   : > { %v807_v26 = vmax.f32 %v799_v20, 0.0  ;;  %v798_v27 = vadd.f32 %v767_v21, %v677_v23  ;;  %v830_v28 = vsel %vm455_vm0, %v820_v22, 0.0  ;;  %v819_v29 = vmul.f32 %v1880_v12, %v804_v19 }
 0x1ac   : > { %831 = vadd.xlane.f32.xlu0 %v830_v28  ;;  %v2018_v30 = vpop.f32.mrf.mxu0 }
 0x1ad   : > { %v806_v32 = vmax.f32 %v798_v27, 0.0  ;;  %v801_v33 = vadd.f32 %v2018_v30, %v779_v24  ;;  %v822_v34 = vmul.f32 %v1880_v12, %v807_v26  ;;  %v827_v37 = vsel %vm455_vm0, %v819_v29, 0.0 }
 0x1ae   : > { %v687_v36 = vpop.f32.mrf.mxu0 }
 0x1af   : > { %v809_v40 = vmax.f32 %v801_v33, 0.0  ;;  %v800_v41 = vadd.f32 %v775_v31, %v687_v36  ;;  %v836_v44 = vsel %vm455_vm0, %v822_v34, 0.0  ;;  %v821_v45 = vmul.f32 %v1880_v12, %v806_v32 }
 0x1b0   : > { %828 = vadd.xlane.f32.xlu0 %v827_v37  ;;  %837 = vadd.xlane.f32.xlu1 %v836_v44  ;;  %v2021_v48 = vpop.f32.mrf.mxu0  ;;  %v2190_v44 = vmov 0  }
 0x1b1   : > { %v808_v49 = vmax.f32 %v800_v41, 0.0  ;;  %v803_v52 = vadd.f32 %v2021_v48, %v787_v38  ;;  %v833_v57 = vsel %vm455_vm0, %v821_v45, 0.0  ;;  %v824_v61 = vmul.f32 %v1880_v12, %v809_v40  ;;  %2106 = vset.pattern.permute.xlu0 %v2190_v44  ;;  %2105 = vset.pattern.permute.xlu1 %v2190_v44 }
 0x1b2   : > { %v697_v55 = vpop.f32.mrf.mxu0  ;;  %v929_v45 = vsub.s32 1, %v2423_v56  ;;  %v933_v48 = vsub.s32 2, %v2423_v56 }
 0x1b3   : > { %v811_v58 = vmax.f32 %v803_v52, 0.0  ;;  %v802_v59 = vadd.f32 %v783_v53, %v697_v55  ;;  %v823_v60 = vmul.f32 %v1880_v12, %v808_v49  ;;  %v842_v0 = vsel %vm455_vm0, %v824_v61, 0.0 }
 0x1b4   : > { %834 = vadd.xlane.f32.xlu1 %v833_v57  ;;  %v937_v49 = vsub.s32 3, %v2423_v56 }
 0x1b5   : > { %v810_v62 = vmax.f32 %v802_v59, 0.0  ;;  %v839_v63 = vsel %vm455_vm0, %v823_v60, 0.0  ;;  %v826_v4 = vmul.f32 %v1880_v12, %v811_v58  ;;  %v941_v58 = vsub.s32 4, %v2423_v56 }
 0x1b6   : > { %840 = vadd.xlane.f32.xlu0 %v839_v63 }
 0x1b7   : > { %v825_v3 = vmul.f32 %v1880_v12, %v810_v62  ;;  %v848_v6 = vsel %vm455_vm0, %v826_v4, 0.0 }
 0x1b8   : > { %843 = vadd.xlane.f32.xlu1 %v842_v0 }
 0x1b9   : > { %v845_v5 = vsel %vm455_vm0, %v825_v3, 0.0  ;;  %v945_v3 = vsub.s32 5, %v2423_v56 }
 0x1ba   : > { %846 = vadd.xlane.f32.xlu0 %v845_v5 }
 0x1bc   : > { %849 = vadd.xlane.f32.xlu1 %v848_v6 }
 0x235   : > { %v832_v7 = vpop.xlane.xlu0 %831 }
 0x236   : > { %v854_v15 = vadd.f32 %v852_v9, %v832_v7  ;;  %v949_v7 = vsub.s32 6, %v2423_v56 }
 0x238   : > { %v878_v19 = vrot.slane %v854_v15, %v2453_v14 }
 0x239   : > { %v829_v10 = vpop.xlane.xlu0 %828  ;;  %v838_v11 = vpop.xlane.xlu1 %837 }
 0x23a   : > { %v853_v13 = vadd.f32 %v852_v9, %v829_v10  ;;  %v856_v16 = vadd.f32 %v852_v9, %v838_v11  ;;  %v953_v11 = vsub.s32 7, %v2423_v56 }
 0x23c   : > { %v874_v12 = vrot.slane %v853_v13, %v2453_v14  ;;  %v886_v23 = vrot.slane %v856_v16, %v2453_v14 }
 0x23d   : > { %v835_v17 = vpop.xlane.xlu1 %834 }
 0x23e   : > { %v855_v18 = vadd.f32 %v852_v9, %v835_v17  ;;  %v904_v22 = vsel %vm903_vm3, %v878_v19, %v874_v12 }
 0x23f   : > { %v841_v20 = vpop.xlane.xlu0 %840 }
 0x240   : > { %v882_v54 = vrot.slane %v855_v18, %v2453_v14  ;;  %v857_v21 = vadd.f32 %v852_v9, %v841_v20 }
 0x241   : > { %v844_v24 = vpop.xlane.xlu1 %843 }
 0x242   : > { %v906_v25 = vsel %vm905_vm4, %v882_v54, %v904_v22  ;;  %v890_v26 = vrot.slane %v857_v21, %v2453_v14  ;;  %v858_v27 = vadd.f32 %v852_v9, %v844_v24 }
 0x243   : > { %v908_v28 = vsel %vm907_vm5, %v886_v23, %v906_v25  ;;  %v847_v29 = vpop.xlane.xlu0 %846 }
 0x244   : > { %v910_v30 = vsel %vm909_vm6, %v890_v26, %v908_v28  ;;  %v894_v31 = vrot.slane %v858_v27, %v2453_v14  ;;  %v859_v32 = vadd.f32 %v852_v9, %v847_v29 }
 0x245   : > { %v850_v33 = vpop.xlane.xlu1 %849 }
 0x246   : > { %v898_v34 = vrot.slane %v859_v32, %v2453_v14  ;;  %v860_v35 = vadd.f32 %v852_v9, %v850_v33  ;;  %v912_v36 = vsel %vm911_vm7, %v894_v31, %v910_v30 }
 0x248   : > { %v902_v37 = vrot.slane %v860_v35, %v2453_v14  ;;  %v914_v38 = vsel %vm913_vm8, %v898_v34, %v912_v36 }
 0x24a   : > { %v916_v40 = vsel %vm915_vm9, %v902_v37, %v914_v38 }
 0x24b   : > { %v919_v41 = vsel %vm918_vm10, %v916_v40, -inf }
 0x24c   : > { %920 = vmax.xlane.f32.xlu0 %v919_v41 }
 0x2d5   : > { %v921_v52 = vpop.xlane.xlu0 %920 }
 0x2d6   : > { %v926_v53 = vrot.slane %v921_v52, %v2430_v1  ;;  %v930_v55 = vrot.slane %v921_v52, %v929_v45  ;;  %v934_v57 = vrot.slane %v921_v52, %v933_v48  ;;  %v938_v59 = vrot.slane %v921_v52, %v937_v49 }
 0x2d7   : > { %v942_v4 = vrot.slane %v921_v52, %v941_v58  ;;  %v946_v8 = vrot.slane %v921_v52, %v945_v3 }
 0x2d8   : > { %v963_v60 = vsub.f32 %v853_v13, %v926_v53  ;;  %v964_v61 = vsub.f32 %v854_v15, %v930_v55  ;;  %v965_v62 = vsub.f32 %v855_v18, %v934_v57  ;;  %v966_v5 = vsub.f32 %v856_v16, %v938_v59 }
 0x2d9   : > { %v967_v9 = vsub.f32 %v857_v21, %v942_v4  ;;  %v950_v13 = vrot.slane %v921_v52, %v949_v7  ;;  %v968_v15 = vsub.f32 %v858_v27, %v946_v8  ;;  %v954_v16 = vrot.slane %v921_v52, %v953_v11 }
 0x2da   : > { %v971_v63 = vmul.f32 1.442695, %v963_v60  ;;  %v973_v0 = vmul.f32 1.442695, %v964_v61  ;;  %v975_v6 = vmul.f32 1.442695, %v965_v62 }
 0x2db   : > { %v977_v10 = vmul.f32 1.442695, %v966_v5  ;;  %v979_v12 = vmul.f32 1.442695, %v967_v9  ;;  %v969_v17 = vsub.f32 %v859_v32, %v950_v13  ;;  %v981_v18 = vmul.f32 1.442695, %v968_v15 }
 0x2dc   : > { %2107 = vpow2.f32 %v971_v63  ;;  %v970_v54 = vsub.f32 %v860_v35, %v954_v16 }
 0x2dd   : > { %2109 = vpow2.f32 %v973_v0  ;;  %v983_v21 = vmul.f32 1.442695, %v969_v17 }
 0x2de   : > { %2111 = vpow2.f32 %v975_v6  ;;  %v985_v23 = vmul.f32 1.442695, %v970_v54 }
 0x2df   : > { %2113 = vpow2.f32 %v977_v10 }
 0x2e0   : > { %2115 = vpow2.f32 %v979_v12 }
 0x2e1   : > { %2117 = vpow2.f32 %v981_v18 }
 0x2e2   : > { %2119 = vpow2.f32 %v983_v21 }
 0x2e3   : > { %2121 = vpow2.f32 %v985_v23 }
 0x2e9   : > { %v2108_v19 = vpop.eup %2107 }
 0x2ea   : > { %v2110_v20 = vpop.eup %2109  ;;  %996 = vperm.xlu1 %2105, %v2108_v19  }
 0x2eb   : > { %999 = vperm.xlu0 %2106, %v2110_v20   ;;  %v2112_v22 = vpop.eup %2111 }
 0x2ec   : > { %v2114_v24 = vpop.eup %2113 }
 0x2ed   : > { %v2116_v25 = vpop.eup %2115 }
 0x2ee   : > { %1002 = vperm.xlu1 %2105, %v2112_v22   ;;  %v2118_v26 = vpop.eup %2117 }
 0x2ef   : > { %v2120_v27 = vpop.eup %2119 }
 0x2f0   : > { %v2122_v28 = vpop.eup %2121 }
 0x2f2   : > { %1005 = vperm.xlu1 %2105, %v2114_v24  }
 0x2f6   : > { %1008 = vperm.xlu1 %2105, %v2116_v25  }
 0x2fa   : > { %1011 = vperm.xlu1 %2105, %v2118_v26  }
 0x2fe   : > { %1014 = vperm.xlu1 %2105, %v2120_v27  }
 0x302   : > { %1017 = vperm.xlu1 %2105, %v2122_v28  }
 0x365   : > { %v997_v29 = vpop.permute.xlu1 %996 }
 0x366   : > { %v1000_v33 = vpop.permute.xlu0 %999  ;;  %v1022_v36 = vrot.slane %v997_v29, %v2453_v14 }
 0x367   : > { %v1026_v35 = vrot.slane %v1000_v33, %v2453_v14 }
 0x369   : > { %v1003_v30 = vpop.permute.xlu1 %1002  ;;  %v1051_v44 = vsel %vm903_vm3, %v1026_v35, %v1022_v36 }
 0x36a   : > { %v1030_v37 = vrot.slane %v1003_v30, %v2453_v14 }
 0x36c   : > { %v1052_v53 = vsel %vm905_vm4, %v1030_v37, %v1051_v44 }
 0x36d   : > { %v1006_v31 = vpop.permute.xlu1 %1005 }
 0x36e   : > { %v1034_v38 = vrot.slane %v1006_v31, %v2453_v14 }
 0x370   : > { %v1053_v57 = vsel %vm907_vm5, %v1034_v38, %v1052_v53 }
 0x371   : > { %v1009_v32 = vpop.permute.xlu1 %1008 }
 0x372   : > { %v1038_v40 = vrot.slane %v1009_v32, %v2453_v14 }
 0x374   : > { %v1054_v59 = vsel %vm909_vm6, %v1038_v40, %v1053_v57 }
 0x375   : > { %v1012_v34 = vpop.permute.xlu1 %1011 }
 0x376   : > { %v1042_v52 = vrot.slane %v1012_v34, %v2453_v14 }
 0x378   : > { %v1055_v61 = vsel %vm911_vm7, %v1042_v52, %v1054_v59 }
 0x379   : > { %v1015_v41 = vpop.permute.xlu1 %1014 }
 0x37a   : > { %v1046_v55 = vrot.slane %v1015_v41, %v2453_v14 }
 0x37c   : > { %v1056_v63 = vsel %vm913_vm8, %v1046_v55, %v1055_v61 }
 0x37d   : > { %v1018_v60 = vpop.permute.xlu1 %1017 }
 0x37e   : > { %v1050_v62 = vrot.slane %v1018_v60, %v2453_v14 }
 0x380   : > { %v1057_v0 = vsel %vm915_vm9, %v1050_v62, %v1056_v63 }
 0x381   : > { %v1059_v4 = vsel %vm918_vm10, %v1057_v0, 0.0 }
 0x382   : > { %1060 = vadd.xlane.f32.xlu1 %v1059_v4 }
 0x40b   : > { %v1061_v5 = vpop.xlane.xlu1 %1060 }
 0x40c   : > { %2123 = vrcp.f32 %v1061_v5 }
 0x419   : > { %v2124_v6 = vpop.eup %2123 }
 0x41a   : > { %v1067_v8 = vrot.slane %v2124_v6, %v2430_v1  ;;  %v1071_v10 = vrot.slane %v2124_v6, %v929_v45  ;;  %v1075_v15 = vrot.slane %v2124_v6, %v933_v48  ;;  %v1079_v16 = vrot.slane %v2124_v6, %v937_v49 }
 0x41b   : > { %v1083_v18 = vrot.slane %v2124_v6, %v941_v58  ;;  %v1087_v45 = vrot.slane %v2124_v6, %v945_v3  ;;  %v1091_v48 = vrot.slane %v2124_v6, %v949_v7  ;;  %v1095_v49 = vrot.slane %v2124_v6, %v953_v11 }
 0x41c   : > { %v1104_v9 = vmul.f32 %v2108_v19, %v1067_v8  ;;  %v1105_v13 = vmul.f32 %v2110_v20, %v1071_v10  ;;  %v1106_v12 = vmul.f32 %v2112_v22, %v1075_v15  ;;  %v1107_v17 = vmul.f32 %v2114_v24, %v1079_v16 }
 0x41d   : > { %v1108_v1 = vmul.f32 %v2116_v25, %v1083_v18  ;;  %v1109_v19 = vmul.f32 %v2118_v26, %v1087_v45  ;;  %v1110_v20 = vmul.f32 %v2120_v27, %v1091_v48  ;;  %v1111_v54 = vmul.f32 %v2122_v28, %v1095_v49 }
 0x41e   : > { %1114 = vperm.xlu0 %2106, %v1104_v9  }
 0x422   : > { %1194 = vperm.xlu0 %2106, %v1105_v13  }
 0x426   : > { %1274 = vperm.xlu0 %2106, %v1106_v12  }
 0x42a   : > { %1354 = vperm.xlu0 %2106, %v1107_v17  }
 0x42e   : > { %1434 = vperm.xlu0 %2106, %v1108_v1  }
 0x432   : > { %1514 = vperm.xlu0 %2106, %v1109_v19  }
 0x436   : > { %1594 = vperm.xlu0 %2106, %v1110_v20  }
 0x43a   : > { %1674 = vperm.xlu0 %2106, %v1111_v54  }
 0x499   : > { %v1115_v21 = vpop.permute.xlu0 %1114 }
 0x49a   : > { %v1119_v58 = vrot.slane %v1115_v21, %v2453_v14 }
 0x49c   : > { %2025 = vmatmul.mubr.msk.f32.vlgmr.msra.gmra.mxu1 %vm918_vm10, %v1119_v58 }
 0x49d   : > { %2028 = vmatpush3.msra.mxu1 %v2400_v39  ;;  %v1195_v3 = vpop.permute.xlu0 %1194  ;;  %2029 = vmatprep.mubr.msk.f32.mxu1 %vm2188_vm1, %v2187_v2 }
 0x49e   : > { %v1199_v7 = vrot.slane %v1195_v3, %v2453_v14  ;;  %2032 = vmatprep.subr.mxu1 %v2187_v2 }
 0x4a0   : > { %2030 = vmatmul.mubr.msk.f32.vlgmr.msra.gmra.mxu1 %vm918_vm10, %v1199_v7 }
 0x4a1   : > { %2033 = vmatpush3.msra.mxu1 %v2404_v42  ;;  %v1275_v56 = vpop.permute.xlu0 %1274  ;;  %2034 = vmatprep.mubr.msk.f32.mxu1 %vm2188_vm1, %v2187_v2 }
 0x4a2   : > { %v1279_v11 = vrot.slane %v1275_v56, %v2453_v14  ;;  %2037 = vmatprep.subr.mxu1 %v2187_v2 }
 0x4a4   : > { %2035 = vmatmul.mubr.msk.f32.vlgmr.msra.gmra.mxu1 %vm918_vm10, %v1279_v11 }
 0x4a5   : > { %2038 = vmatpush3.msra.mxu1 %v2406_v43  ;;  %v1355_v39 = vpop.permute.xlu0 %1354  ;;  %2039 = vmatprep.mubr.msk.f32.mxu1 %vm2188_vm1, %v2187_v2 }
 0x4a6   : > { %v1359_v22 = vrot.slane %v1355_v39, %v2453_v14  ;;  %2042 = vmatprep.subr.mxu1 %v2187_v2 }
 0x4a8   : > { %2040 = vmatmul.mubr.msk.f32.vlgmr.msra.gmra.mxu1 %vm918_vm10, %v1359_v22 }
 0x4a9   : > { %2043 = vmatpush3.msra.mxu1 %v2410_v46  ;;  %v1435_v42 = vpop.permute.xlu0 %1434  ;;  %2044 = vmatprep.mubr.msk.f32.mxu1 %vm2188_vm1, %v2187_v2 }
 0x4aa   : > { %v1439_v23 = vrot.slane %v1435_v42, %v2453_v14  ;;  %2047 = vmatprep.subr.mxu1 %v2187_v2 }
 0x4ac   : > { %2045 = vmatmul.mubr.msk.f32.vlgmr.msra.gmra.mxu1 %vm918_vm10, %v1439_v23 }
 0x4ad   : > { %2048 = vmatpush3.msra.mxu1 %v2412_v47  ;;  %v1515_v43 = vpop.permute.xlu0 %1514  ;;  %2049 = vmatprep.mubr.msk.f32.mxu1 %vm2188_vm1, %v2187_v2 }
 0x4ae   : > { %v1519_v24 = vrot.slane %v1515_v43, %v2453_v14  ;;  %2052 = vmatprep.subr.mxu1 %v2187_v2 }
 0x4b0   : > { %2050 = vmatmul.mubr.msk.f32.vlgmr.msra.gmra.mxu1 %vm918_vm10, %v1519_v24 }
 0x4b1   : > { %2053 = vmatpush3.msra.mxu1 %v2416_v50  ;;  %v1595_v46 = vpop.permute.xlu0 %1594  ;;  %2054 = vmatprep.mubr.msk.f32.mxu1 %vm2188_vm1, %v2187_v2 }
 0x4b2   : > { %v1599_v25 = vrot.slane %v1595_v46, %v2453_v14  ;;  %2057 = vmatprep.subr.mxu1 %v2187_v2 }
 0x4b4   : > { %2055 = vmatmul.mubr.msk.f32.vlgmr.msra.gmra.mxu1 %vm918_vm10, %v1599_v25 }
 0x4b5   : > { %2058 = vmatpush3.msra.mxu1 %v2418_v51  ;;  %v1675_v47 = vpop.permute.xlu0 %1674  ;;  %2059 = vmatprep.mubr.msk.f32.mxu1 %vm2188_vm1, %v2187_v2 }
 0x4b6   : > { %v1679_v26 = vrot.slane %v1675_v47, %v2453_v14 }
 0x4b8   : > { %2060 = vmatmul.mubr.msk.f32.vlgmr.msra.gmra.mxu1 %vm918_vm10, %v1679_v26 }
 0x55c   : > { %v1188_v50 = vpop.f32.mrf.mxu1 }
 0x55e   : > { %v2026_v27 = vpop.f32.mrf.mxu1 }
 0x560   : > { %v1268_v28 = vpop.f32.mrf.mxu1 }
 0x561   : > { %v1760_v36 = vrot.slane %v1268_v28, 7 }
 0x562   : > { %v2031_v29 = vpop.f32.mrf.mxu1 }
 0x563   : > { %v1761_v41 = vsel %vm903_vm3, %v1760_v36, %v1188_v50 }
 0x564   : > { %v1348_v30 = vpop.f32.mrf.mxu1 }
 0x565   : > { %v1762_v2 = vrot.slane %v1348_v30, 6 }
 0x566   : > { %v2036_v31 = vpop.f32.mrf.mxu1 }
 0x567   : > { %v1763_v52 = vsel %vm905_vm4, %v1762_v2, %v1761_v41 }
 0x568   : > { %v1428_v32 = vpop.f32.mrf.mxu1 }
 0x569   : > { %v1764_v14 = vrot.slane %v1428_v32, 5 }
 0x56a   : > { %v2041_v33 = vpop.f32.mrf.mxu1 }
 0x56b   : > { %v1765_v57 = vsel %vm907_vm5, %v1764_v14, %v1763_v52 }
 0x56c   : > { %v1508_v34 = vpop.f32.mrf.mxu1 }
 0x56d   : > { %v1766_v38 = vrot.slane %v1508_v34, 4 }
 0x56e   : > { %v2046_v35 = vpop.f32.mrf.mxu1 }
 0x56f   : > { %v1767_v59 = vsel %vm909_vm6, %v1766_v38, %v1765_v57 }
 0x570   : > { %v1588_v51 = vpop.f32.mrf.mxu1 }
 0x571   : > { %v1768_v44 = vrot.slane %v1588_v51, 3 }
 0x572   : > { %v2051_v37 = vpop.f32.mrf.mxu1 }
 0x573   : > { %v1769_v61 = vsel %vm911_vm7, %v1768_v44, %v1767_v59 }
 0x574   : > { %v1668_v40 = vpop.f32.mrf.mxu1 }
 0x575   : > { %v1770_v53 = vrot.slane %v1668_v40, 2 }
 0x576   : > { %v2056_v55 = vpop.f32.mrf.mxu1 }
 0x577   : > { %v1771_v63 = vsel %vm913_vm8, %v1770_v53, %v1769_v61 }
 0x578   : > { %v1748_v60 = vpop.f32.mrf.mxu1 }
 0x579   : > { %v1772_v62 = vrot.slane %v1748_v60, 1 }
 0x57a   : > { %v2061_v0 = vpop.f32.mrf.mxu1 }
 0x57b   : > { %v1773_v4 = vsel %vm915_vm9, %v1772_v62, %v1771_v63 }
 0x57c   : > { %1775 = vst [vmem:[%s340_s29] sm:$0xff] %v1773_v4 }
 0x57d   : > { %2138 = shalt.err (!%p2135_p4)
}
 0x57e   : > { %s2139_s17 = scalar_lea.hbm %s2578_s28, 128  ;;  %s2143_s23 = scalar_lea.hbm %s2623_s9, 256 }
 0x57f   : > { %p2140_p7 = scmp.ne.s32.totalorder %s2578_s28, %s2139_s17  ;;  %p2144_p10 = scmp.lt.s32.totalorder %s2578_s28, %s2623_s9 }
 0x580   : > { %p2145_p11 = scmp.lt.s32.totalorder %s2143_s23, %s2139_s17 }
 0x581   : > { %p2141_p8 = pnand %p2140_p7, %p2283_p5 }
 0x582   : > { %p2146_p12 = por %p2145_p11, %p2144_p10 }
 0x583   : > { %p2142_p9 = pneg %p2141_p8 }
 0x585   : > { %p2147_p13 = pnand %p2146_p12, %p2142_p9 }
 0x587   : > { %2150 = shalt.err (!%p2147_p13)
}
 0x588   : > { %2062 = dma.vmem_to_hbm [thread:$0]  (%p2283_p5), %s1791_s24, 128, %s2578_s28, %s1777_s8  }
 0x589 PF: > { %p2068_p0 = scmp.ge.s32.totalorder %s2185_s14, 2  ;;  %s1802_s27 = sand.u32 1, %s2173_s11  }
 0x58a   : > { %s1803_s30 = scalar_lea.sflag [#allocation4], %s1802_s27 }
 0x58b   : > { %p2065_p1 = pnand %p2068_p0, %p2287_p6 }
 0x58d   : > { %p2066_p2 = pneg %p2065_p1 }
 0x58f   : > { %2168 = dma.done.wait (%p2066_p2), %s1803_s30, 128  }
 0x590   : > { %2170 = vsyncadd (%p2066_p2), %s1803_s30, 4294967168  ;;  %p20_p3 = scmp.ge.s32.totalorder %s2270_s16, 4   ;;  %s2626_s11 = smov %s2177_s12 }
 0x591   : > { %s2627_s12 = smov %s2181_s13  ;;  %s2628_s13 = smov %s2281_s19 }
 0x592   : > { %s2629_s14 = smov %s2270_s16  ;;  %22 = sbr.rel (!%p20_p3) target bundleno = 5 (0x5), region = 94 }
 0x597   :  { %1808 = vsyncpa [#allocation4], 1 }
 0x598   :  { %1810 = vsyncpa [#allocation4 + $0x1], 1 }

</bundles_post_ra>
